<compile_context>
chip_gen: v7x
topology: tpu7x:2x2x1
jax: 0.10.0
libtpu: 0.0.40
codegen_flags: <defaults>
</compile_context>

<pallas_src>
import functools

import jax
import jax.numpy as jnp
from jax.experimental import pallas as pl
from jax.experimental.pallas import tpu as pltpu


def _round_up(x, m):
    return ((x + m - 1) // m) * m


def _vmem_capacity_bytes():
    try:
        return int(pltpu.get_tpu_info().vmem_capacity_bytes)
    except Exception:
        return 128 << 20  # v5e/v6e default; safe fallback


def _auto_block_rows(rows, width, itemsize):
    """Row tile for a (rows, width) streamed layernorm, VMEM- and grid-aware."""
    # Sublane packing: f32 -> 8-row multiples, bf16 -> 16, int8/fp8 -> 32.
    mult = max(8, 32 // itemsize)
    if rows <= mult:
        return rows  # whole (tiny) array as one block

    # Bytes resident in VMEM per row of tile:
    #   3 streamed arrays (x, sublayer_out, out) x 2 pipeline buffers -> 6*W*itemsize
    #   ~3 f32 compute temporaries (y, centered, normalized)          -> 3*W*4
    per_row = 6 * width * itemsize + 3 * width * 4
    vmem_cap = _vmem_capacity_bytes()
    target = min(48 << 20, (vmem_cap * 7) // 10)  # v7x: 64 MiB/TC -> ~44.8 MiB

    br = max(mult, (int(target // per_row) // mult) * mult)
    br = min(br, _round_up(rows, mult))  # never (much) bigger than the problem

    # For large problems, guarantee >= ~8 grid steps so both v7x TensorCores get
    # work and the double-buffered pipeline actually overlaps DMA with compute.
    if rows >= 2048:
        br = min(br, max(mult, _round_up(pl.cdiv(rows, 8), mult)))
    return br


def _sublayer_connection_kernel(x_ref, sub_ref, w_ref, b_ref, o_ref, *,
                                eps, hidden, fold):
    # Residual add (dropout == identity in eval mode); compute in f32.
    y = x_ref[...].astype(jnp.float32) + sub_ref[...].astype(jnp.float32)  # (br, fold*H)
    w = w_ref[...].astype(jnp.float32)  # (1, fold*H)
    b = b_ref[...].astype(jnp.float32)  # (1, fold*H)

    denom = max(hidden - 1, 1)  # guard degenerate H == 1

    pieces = []
    for g in range(fold):
        # Static lane slice per logical row group (identity when fold == 1).
        yg = y if fold == 1 else y[:, g * hidden:(g + 1) * hidden]
        mean = jnp.mean(yg, axis=-1, keepdims=True)
        cen = yg - mean
        # torch.Tensor.std default: unbiased (Bessel correction, divide by H-1).
        var = jnp.sum(cen * cen, axis=-1, keepdims=True) * (1.0 / denom)
        d = jnp.sqrt(var) + eps  # eps added to the *std*, as in the reference
        # EUP reciprocal (free slot) + one Newton step for full f32 accuracy.
        inv = pl.reciprocal(d, approx=True)
        inv = inv * (2.0 - d * inv)
        pieces.append(cen * inv)

    norm = pieces[0] if fold == 1 else jnp.concatenate(pieces, axis=-1)
    o_ref[...] = (norm * w + b).astype(o_ref.dtype)


def sublayer_connection(x, sublayer_out, weight, bias, *, eps=1e-6, block_rows=None):
    """x, sublayer_out: [B, T, H]; weight, bias: [H]. Returns [B, T, H]."""
    B, T, H = x.shape
    rows = B * T
    itemsize = jnp.dtype(x.dtype).itemsize

    # Lane folding for small hidden dims: pack `fold` consecutive rows into the
    # lane dimension (pure reshape in HBM) so the kernel's last dim is 128-dense.
    fold = 1
    if H < 128 and 128 % H == 0:
        f = 128 // H
        if rows % f == 0:
            fold = f
    W = fold * H
    rows_f = rows // fold

    x2 = x.reshape(rows_f, W)
    s2 = sublayer_out.reshape(rows_f, W)
    w2 = weight.reshape(1, H) if fold == 1 else jnp.tile(weight.reshape(1, H), (1, fold))
    b2 = bias.reshape(1, H) if fold == 1 else jnp.tile(bias.reshape(1, H), (1, fold))

    if block_rows is None:
        block_rows = _auto_block_rows(rows_f, W, itemsize)

    grid = pl.cdiv(rows_f, block_rows)  # ragged last block handled by Pallas masking

    # Honest VMEM accounting: streamed double buffers + f32 temps + params + headroom.
    vmem_cap = _vmem_capacity_bytes()
    working = (6 * block_rows * W * itemsize      # x, sub, out (double-buffered)
               + 3 * block_rows * W * 4           # f32 compute temporaries
               + 4 * W * 4)                       # weight/bias
    vmem_limit = int(max(16 << 20, min(working + (4 << 20), vmem_cap - (8 << 20))))

    kernel = functools.partial(_sublayer_connection_kernel,
                               eps=eps, hidden=H, fold=fold)

    out = pl.pallas_call(
        kernel,
        out_shape=jax.ShapeDtypeStruct((rows_f, W), x.dtype),
        grid_spec=pltpu.PrefetchScalarGridSpec(
            num_scalar_prefetch=0,
            grid=(grid,),
            in_specs=[
                pl.BlockSpec((block_rows, W), lambda i: (i, 0)),
                pl.BlockSpec((block_rows, W), lambda i: (i, 0)),
                pl.BlockSpec((1, W), lambda i: (0, 0)),
                pl.BlockSpec((1, W), lambda i: (0, 0)),
            ],
            out_specs=pl.BlockSpec((block_rows, W), lambda i: (i, 0)),
        ),
        compiler_params=pltpu.CompilerParams(
            dimension_semantics=("parallel",),  # megacore sharding on v7x
            vmem_limit_bytes=vmem_limit,
        ),
    )(x2, s2, w2, b2)

    return out.reshape(B, T, H)


def _reference(x, sublayer_out, weight, bias, eps):
    xf = x.astype(jnp.float32)
    sf = sublayer_out.astype(jnp.float32)
    y = xf + sf
    H = y.shape[-1]
    mean = jnp.mean(y, axis=-1, keepdims=True)
    std = jnp.sqrt(jnp.sum((y - mean) ** 2, axis=-1, keepdims=True) / max(H - 1, 1))
    out = weight.astype(jnp.float32) * (y - mean) / (std + eps) + bias.astype(jnp.float32)
    return out.astype(x.dtype)


if __name__ == "__main__":
    key = jax.random.PRNGKey(0)

    def run_case(B, T, H, dtype, atol, rtol):
        kx, kw, kb = jax.random.split(jax.random.fold_in(key, B * 1000 + T * 10 + H), 3)
        x = jax.random.normal(kx, (B, T, H), dtype=jnp.float32).astype(dtype)

        # Deterministic "sublayer": a simple linear layer evaluated in plain JAX
        # (the SublayerConnection module itself does not own these params).
        sub_w = (jax.random.normal(kw, (H, H), dtype=jnp.float32) * 0.05).astype(dtype)
        sub_b = (jax.random.normal(kb, (H,), dtype=jnp.float32) * 0.01).astype(dtype)
        sublayer_out = (x @ sub_w + sub_b).astype(dtype)

        # LayerNorm params (module __init__: ones / zeros).
        ln_weight = jnp.ones((H,), dtype=jnp.float32)
        ln_bias = jnp.zeros((H,), dtype=jnp.float32)

        out = sublayer_connection(x, sublayer_out, ln_weight, ln_bias, eps=1e-6)
        out = jax.block_until_ready(out)

        ref = _reference(x, sublayer_out, ln_weight, ln_bias, 1e-6)
        ok = jnp.allclose(out.astype(jnp.float32), ref.astype(jnp.float32),
                          atol=atol, rtol=rtol)
        assert bool(ok), f"mismatch vs reference for shape {(B, T, H)} dtype {dtype}"

    # Small canonical case (H=32 exercises the lane-folding path, fold=4).
    run_case(2, 8, 32, jnp.float32, atol=5e-5, rtol=5e-5)
    # Non-divisible row count exercises the ragged (masked) last block, fold=1.
    run_case(3, 37, 128, jnp.float32, atol=5e-5, rtol=5e-5)
    # bf16 I/O (halves HBM traffic on this bandwidth-bound kernel), 16-row tiles.
    run_case(2, 130, 256, jnp.bfloat16, atol=3e-2, rtol=3e-2)

    print("KERNEL_OK")
</pallas_src>

<mosaic_0001>
module attributes {stable_mosaic.version = 11 : i64} {
  func.func @_sublayer_connection_kernel(%arg0: i32, %arg1: memref<4x128xf32, #tpu.memory_space<vmem>>, %arg2: memref<4x128xf32, #tpu.memory_space<vmem>>, %arg3: memref<1x128xf32, #tpu.memory_space<vmem>>, %arg4: memref<1x128xf32, #tpu.memory_space<vmem>>, %arg5: memref<4x128xf32, #tpu.memory_space<vmem>>) attributes {dimension_semantics = [#tpu.dimension_semantics<parallel>], iteration_bounds = array<i64: 1>, scalar_prefetch = 0 : i64, scratch_operands = 0 : i64, tpu.core_type = #tpu.core_type<tc>, window_params = [{transform_indices = @transform_0, window_bounds = array<i64: 4, 128>}, {transform_indices = @transform_1, window_bounds = array<i64: 4, 128>}, {pipeline_mode = #tpu.pipeline_mode<synchronous>, transform_indices = @transform_2, window_bounds = array<i64: 1, 128>}, {pipeline_mode = #tpu.pipeline_mode<synchronous>, transform_indices = @transform_3, window_bounds = array<i64: 1, 128>}, {transform_indices = @transform_4, window_bounds = array<i64: 4, 128>}]} {
    %c0 = arith.constant 0 : index
    %c0_0 = arith.constant 0 : index
    %0 = vector.load %arg1[%c0, %c0_0] : memref<4x128xf32, #tpu.memory_space<vmem>>, vector<4x128xf32>
    %c0_1 = arith.constant 0 : index
    %c0_2 = arith.constant 0 : index
    %1 = vector.load %arg2[%c0_1, %c0_2] : memref<4x128xf32, #tpu.memory_space<vmem>>, vector<4x128xf32>
    %2 = arith.addf %0, %1 : vector<4x128xf32>
    %c0_3 = arith.constant 0 : index
    %c0_4 = arith.constant 0 : index
    %3 = vector.load %arg3[%c0_3, %c0_4] : memref<1x128xf32, #tpu.memory_space<vmem>>, vector<1x128xf32>
    %c0_5 = arith.constant 0 : index
    %c0_6 = arith.constant 0 : index
    %4 = vector.load %arg4[%c0_5, %c0_6] : memref<1x128xf32, #tpu.memory_space<vmem>>, vector<1x128xf32>
    %5 = vector.extract_strided_slice %2 {offsets = [0, 0], sizes = [4, 32], strides = [1, 1]} : vector<4x128xf32> to vector<4x32xf32>
    %cst = arith.constant dense<0.000000e+00> : vector<4xf32>
    %6 = vector.multi_reduction <add>, %5, %cst [1] : vector<4x32xf32> to vector<4xf32>
    %7 = vector.shape_cast %6 : vector<4xf32> to vector<4x1xf32>
    %cst_7 = arith.constant 3.200000e+01 : f32
    %8 = vector.broadcast %cst_7 : f32 to vector<4x1xf32>
    %9 = arith.divf %7, %8 : vector<4x1xf32>
    %10 = vector.broadcast %9 : vector<4x1xf32> to vector<4x32xf32>
    %11 = arith.subf %5, %10 : vector<4x32xf32>
    %12 = arith.mulf %11, %11 : vector<4x32xf32>
    %cst_8 = arith.constant dense<0.000000e+00> : vector<4xf32>
    %13 = vector.multi_reduction <add>, %12, %cst_8 [1] : vector<4x32xf32> to vector<4xf32>
    %14 = vector.shape_cast %13 : vector<4xf32> to vector<4x1xf32>
    %cst_9 = arith.constant 0.0322580636 : f32
    %15 = vector.broadcast %cst_9 : f32 to vector<4x1xf32>
    %16 = arith.mulf %14, %15 : vector<4x1xf32>
    %17 = math.sqrt %16 : vector<4x1xf32>
    %cst_10 = arith.constant 9.99999997E-7 : f32
    %18 = vector.broadcast %cst_10 : f32 to vector<4x1xf32>
    %19 = arith.addf %17, %18 : vector<4x1xf32>
    %20 = tpu.reciprocal %19 {approx = true} : vector<4x1xf32> -> vector<4x1xf32>
    %21 = arith.mulf %19, %20 : vector<4x1xf32>
    %cst_11 = arith.constant 2.000000e+00 : f32
    %22 = vector.broadcast %cst_11 : f32 to vector<4x1xf32>
    %23 = arith.subf %22, %21 : vector<4x1xf32>
    %24 = arith.mulf %20, %23 : vector<4x1xf32>
    %25 = vector.broadcast %24 : vector<4x1xf32> to vector<4x32xf32>
    %26 = arith.mulf %11, %25 : vector<4x32xf32>
    %27 = vector.extract_strided_slice %2 {offsets = [0, 32], sizes = [4, 32], strides = [1, 1]} : vector<4x128xf32> to vector<4x32xf32>
    %cst_12 = arith.constant dense<0.000000e+00> : vector<4xf32>
    %28 = vector.multi_reduction <add>, %27, %cst_12 [1] : vector<4x32xf32> to vector<4xf32>
    %29 = vector.shape_cast %28 : vector<4xf32> to vector<4x1xf32>
    %cst_13 = arith.constant 3.200000e+01 : f32
    %30 = vector.broadcast %cst_13 : f32 to vector<4x1xf32>
    %31 = arith.divf %29, %30 : vector<4x1xf32>
    %32 = vector.broadcast %31 : vector<4x1xf32> to vector<4x32xf32>
    %33 = arith.subf %27, %32 : vector<4x32xf32>
    %34 = arith.mulf %33, %33 : vector<4x32xf32>
    %cst_14 = arith.constant dense<0.000000e+00> : vector<4xf32>
    %35 = vector.multi_reduction <add>, %34, %cst_14 [1] : vector<4x32xf32> to vector<4xf32>
    %36 = vector.shape_cast %35 : vector<4xf32> to vector<4x1xf32>
    %cst_15 = arith.constant 0.0322580636 : f32
    %37 = vector.broadcast %cst_15 : f32 to vector<4x1xf32>
    %38 = arith.mulf %36, %37 : vector<4x1xf32>
    %39 = math.sqrt %38 : vector<4x1xf32>
    %cst_16 = arith.constant 9.99999997E-7 : f32
    %40 = vector.broadcast %cst_16 : f32 to vector<4x1xf32>
    %41 = arith.addf %39, %40 : vector<4x1xf32>
    %42 = tpu.reciprocal %41 {approx = true} : vector<4x1xf32> -> vector<4x1xf32>
    %43 = arith.mulf %41, %42 : vector<4x1xf32>
    %cst_17 = arith.constant 2.000000e+00 : f32
    %44 = vector.broadcast %cst_17 : f32 to vector<4x1xf32>
    %45 = arith.subf %44, %43 : vector<4x1xf32>
    %46 = arith.mulf %42, %45 : vector<4x1xf32>
    %47 = vector.broadcast %46 : vector<4x1xf32> to vector<4x32xf32>
    %48 = arith.mulf %33, %47 : vector<4x32xf32>
    %49 = vector.extract_strided_slice %2 {offsets = [0, 64], sizes = [4, 32], strides = [1, 1]} : vector<4x128xf32> to vector<4x32xf32>
    %cst_18 = arith.constant dense<0.000000e+00> : vector<4xf32>
    %50 = vector.multi_reduction <add>, %49, %cst_18 [1] : vector<4x32xf32> to vector<4xf32>
    %51 = vector.shape_cast %50 : vector<4xf32> to vector<4x1xf32>
    %cst_19 = arith.constant 3.200000e+01 : f32
    %52 = vector.broadcast %cst_19 : f32 to vector<4x1xf32>
    %53 = arith.divf %51, %52 : vector<4x1xf32>
    %54 = vector.broadcast %53 : vector<4x1xf32> to vector<4x32xf32>
    %55 = arith.subf %49, %54 : vector<4x32xf32>
    %56 = arith.mulf %55, %55 : vector<4x32xf32>
    %cst_20 = arith.constant dense<0.000000e+00> : vector<4xf32>
    %57 = vector.multi_reduction <add>, %56, %cst_20 [1] : vector<4x32xf32> to vector<4xf32>
    %58 = vector.shape_cast %57 : vector<4xf32> to vector<4x1xf32>
    %cst_21 = arith.constant 0.0322580636 : f32
    %59 = vector.broadcast %cst_21 : f32 to vector<4x1xf32>
    %60 = arith.mulf %58, %59 : vector<4x1xf32>
    %61 = math.sqrt %60 : vector<4x1xf32>
    %cst_22 = arith.constant 9.99999997E-7 : f32
    %62 = vector.broadcast %cst_22 : f32 to vector<4x1xf32>
    %63 = arith.addf %61, %62 : vector<4x1xf32>
    %64 = tpu.reciprocal %63 {approx = true} : vector<4x1xf32> -> vector<4x1xf32>
    %65 = arith.mulf %63, %64 : vector<4x1xf32>
    %cst_23 = arith.constant 2.000000e+00 : f32
    %66 = vector.broadcast %cst_23 : f32 to vector<4x1xf32>
    %67 = arith.subf %66, %65 : vector<4x1xf32>
    %68 = arith.mulf %64, %67 : vector<4x1xf32>
    %69 = vector.broadcast %68 : vector<4x1xf32> to vector<4x32xf32>
    %70 = arith.mulf %55, %69 : vector<4x32xf32>
    %71 = vector.extract_strided_slice %2 {offsets = [0, 96], sizes = [4, 32], strides = [1, 1]} : vector<4x128xf32> to vector<4x32xf32>
    %cst_24 = arith.constant dense<0.000000e+00> : vector<4xf32>
    %72 = vector.multi_reduction <add>, %71, %cst_24 [1] : vector<4x32xf32> to vector<4xf32>
    %73 = vector.shape_cast %72 : vector<4xf32> to vector<4x1xf32>
    %cst_25 = arith.constant 3.200000e+01 : f32
    %74 = vector.broadcast %cst_25 : f32 to vector<4x1xf32>
    %75 = arith.divf %73, %74 : vector<4x1xf32>
    %76 = vector.broadcast %75 : vector<4x1xf32> to vector<4x32xf32>
    %77 = arith.subf %71, %76 : vector<4x32xf32>
    %78 = arith.mulf %77, %77 : vector<4x32xf32>
    %cst_26 = arith.constant dense<0.000000e+00> : vector<4xf32>
    %79 = vector.multi_reduction <add>, %78, %cst_26 [1] : vector<4x32xf32> to vector<4xf32>
    %80 = vector.shape_cast %79 : vector<4xf32> to vector<4x1xf32>
    %cst_27 = arith.constant 0.0322580636 : f32
    %81 = vector.broadcast %cst_27 : f32 to vector<4x1xf32>
    %82 = arith.mulf %80, %81 : vector<4x1xf32>
    %83 = math.sqrt %82 : vector<4x1xf32>
    %cst_28 = arith.constant 9.99999997E-7 : f32
    %84 = vector.broadcast %cst_28 : f32 to vector<4x1xf32>
    %85 = arith.addf %83, %84 : vector<4x1xf32>
    %86 = tpu.reciprocal %85 {approx = true} : vector<4x1xf32> -> vector<4x1xf32>
    %87 = arith.mulf %85, %86 : vector<4x1xf32>
    %cst_29 = arith.constant 2.000000e+00 : f32
    %88 = vector.broadcast %cst_29 : f32 to vector<4x1xf32>
    %89 = arith.subf %88, %87 : vector<4x1xf32>
    %90 = arith.mulf %86, %89 : vector<4x1xf32>
    %91 = vector.broadcast %90 : vector<4x1xf32> to vector<4x32xf32>
    %92 = arith.mulf %77, %91 : vector<4x32xf32>
    %93 = tpu.concatenate %26, %48, %70, %92 in 1 : vector<4x32xf32>, vector<4x32xf32>, vector<4x32xf32>, vector<4x32xf32> -> vector<4x128xf32>
    %94 = vector.broadcast %3 : vector<1x128xf32> to vector<4x128xf32>
    %95 = arith.mulf %93, %94 : vector<4x128xf32>
    %96 = vector.broadcast %4 : vector<1x128xf32> to vector<4x128xf32>
    %97 = arith.addf %95, %96 : vector<4x128xf32>
    %c0_30 = arith.constant 0 : index
    %c0_31 = arith.constant 0 : index
    %98 = vector.load %arg5[%c0_30, %c0_31] : memref<4x128xf32, #tpu.memory_space<vmem>>, vector<4x128xf32>
    tpu.vector_store %arg5[%c0_30, %c0_31], %97 {strides = array<i32>} : memref<4x128xf32, #tpu.memory_space<vmem>>, vector<4x128xf32>,
    return
  }
  func.func @transform_0(%arg0: i32) -> (i32, i32) {
    %c0_i32 = arith.constant 0 : i32
    %c0_i32_0 = arith.constant 0 : i32
    return %arg0, %c0_i32 : i32, i32
  }
  func.func @transform_1(%arg0: i32) -> (i32, i32) {
    %c0_i32 = arith.constant 0 : i32
    %c0_i32_0 = arith.constant 0 : i32
    return %arg0, %c0_i32 : i32, i32
  }
  func.func @transform_2(%arg0: i32) -> (i32, i32) {
    %c0_i32 = arith.constant 0 : i32
    %c0_i32_0 = arith.constant 0 : i32
    %c0_i32_1 = arith.constant 0 : i32
    return %c0_i32, %c0_i32_0 : i32, i32
  }
  func.func @transform_3(%arg0: i32) -> (i32, i32) {
    %c0_i32 = arith.constant 0 : i32
    %c0_i32_0 = arith.constant 0 : i32
    %c0_i32_1 = arith.constant 0 : i32
    return %c0_i32, %c0_i32_0 : i32, i32
  }
  func.func @transform_4(%arg0: i32) -> (i32, i32) {
    %c0_i32 = arith.constant 0 : i32
    %c0_i32_0 = arith.constant 0 : i32
    return %arg0, %c0_i32 : i32, i32
  }
}

</mosaic_0001>

<bundles_post_ra>
// kernel: tpu_custom_call.1
= control target key start
LH: loop header
LB: loop body
LE: loop exit
PB: predicated region body
PF: predicated region fallthrough
CT: control target
= control target key end

     0   :  { %9 = vsyncpa [#allocation3], 0  ;;  %s397_s0 = inlined_call_operand.hbm [shape: f32[4,128], index: 0, kind: input, shape index: {}]   ;;  %s398_s1 = inlined_call_operand.hbm [shape: f32[4,128], index: 1, kind: input, shape index: {}]   ;;  %s399_s2 = inlined_call_operand.vmem [shape: f32[1,128], index: 2, kind: input, shape index: {}]   ;;  %s400_s3 = inlined_call_operand.vmem [shape: f32[1,128], index: 3, kind: input, shape index: {}]   ;;  %s401_s4 = inlined_call_operand.hbm [shape: f32[4,128], index: 4, kind: output, shape index: {}]  }
   0x1   :  { %10 = vsyncpa [#allocation6], 0 }
   0x2   :  { %11 = vsyncpa [#allocation4], 0  ;;  %s296_s15 = smov [#allocation2]   ;;  %s297_s17 = smov [#allocation5]  }
   0x3   :  { %s18_s16 = sshll.u32 %s296_s15, 4  ;;  %s28_s18 = sshll.u32 %s297_s17, 4  ;;  %s19_s16 = int_to_ptr.vmem [resolvable:$true] %s18_s16  ;;  %s29_s18 = int_to_ptr.vmem [resolvable:$true] %s28_s18 }
   0x4   :  { %s224_s21 = scalar_lea.hbm %s397_s0, 64 }
   0x5   :  { %p225_p0 = scmp.ne.s32.totalorder %s397_s0, %s224_s21  ;;  %p228_p1 = scmp.lt.u32.totalorder %s224_s21, %s397_s0 }
   0x7   :  { %p230_p2 = pnand %p228_p1, %p225_p0 }
   0x9   :  { %233 = shalt.err (!%p230_p2)
}
   0xa   :  { %s234_s26 = scalar_lea.vmem %s19_s16, 64  ;;  %p239_p4 = scmp.lt.s32.totalorder %s19_s16, %s19_s16 }
   0xb   :  { %p235_p3 = scmp.ne.s32.totalorder %s19_s16, %s234_s26  ;;  %p240_p5 = scmp.lt.s32.totalorder %s234_s26, %s234_s26 }
   0xd   :  { %p241_p6 = por %p240_p5, %p239_p4 }
   0xf   :  { %p242_p7 = pnand %p241_p6, %p235_p3 }
  0x11   :  { %245 = shalt.err (!%p242_p7)
}
  0x12   :  { %21 = dma.hbm_to_vmem [thread:$0]  %s397_s0, 64, %s19_s16, [#allocation3]  }
  0x13   :  { %s246_s5 = scalar_lea.hbm %s398_s1, 64 }
  0x14   :  { %p247_p8 = scmp.ne.s32.totalorder %s398_s1, %s246_s5  ;;  %p250_p9 = scmp.lt.u32.totalorder %s246_s5, %s398_s1 }
  0x16   :  { %p252_p10 = pnand %p250_p9, %p247_p8 }
  0x18   :  { %255 = shalt.err (!%p252_p10)
}
  0x19   :  { %s256_s10 = scalar_lea.vmem %s29_s18, 64  ;;  %p261_p12 = scmp.lt.s32.totalorder %s29_s18, %s29_s18 }
  0x1a   :  { %p257_p11 = scmp.ne.s32.totalorder %s29_s18, %s256_s10  ;;  %p262_p13 = scmp.lt.s32.totalorder %s256_s10, %s256_s10 }
  0x1c   :  { %p263_p0 = por %p262_p13, %p261_p12 }
  0x1e   :  { %p264_p1 = pnand %p263_p0, %p257_p11 }
  0x20   :  { %267 = shalt.err (!%p264_p1)
}
  0x21   :  { %31 = dma.hbm_to_vmem [thread:$0]  %s398_s1, 64, %s29_s18, [#allocation6]  }
  0x22   :  { %290 = dma.done.wait [#allocation3], 64  }
  0x23   :  { %291 = vsyncadd [#allocation3], 4294967232 }
  0x24   :  { %292 = dma.done.wait [#allocation6], 64  }
  0x25   :  { %293 = vsyncadd [#allocation6], 4294967232  ;;  %v42_v0 = vld [vmem:[#allocation2] sm:$0xf]  ;;  %v43_v1 = vld [vmem:[#allocation5] sm:$0xf] }
  0x26   :  { %v44_v2 = vadd.f32 %v43_v1, %v42_v0  ;;  %s298_s12 = smov 96   ;;  %s299_s13 = smov 32   ;;  %vm47_vm0 = vcmask 257024   ;;  %vm163_vm9 = vcmask 261120   ;;  %vm165_vm10 = vcmask 523264  }
  0x27   :  { %s300_s14 = smov 64   ;;  %vm167_vm11 = vcmask 785408   ;;  %s301_s18 = smov [#allocation7]  }
  0x28   :  { %73 = vrot.lane.b32.xlu0 %v44_v2, %s298_s12  ;;  %133 = vrot.lane.b32.xlu1 %v44_v2, %s299_s13  ;;  %v48_v5 = vsel %vm47_vm0, %v44_v2, 0.0  ;;  %s190_s19 = sshll.u32 %s301_s18, 4  ;;  %s191_s19 = int_to_ptr.vmem [resolvable:$true] %s190_s19 }
  0x29   :  { %s268_s20 = scalar_lea.vmem %s191_s19, 64  ;;  %p273_p3 = scmp.lt.s32.totalorder %s191_s19, %s191_s19 }
  0x2a   :  { %p269_p2 = scmp.ne.s32.totalorder %s191_s19, %s268_s20  ;;  %p274_p4 = scmp.lt.s32.totalorder %s268_s20, %s268_s20 }
  0x2c   :  { %103 = vrot.lane.b32.xlu0 %v44_v2, %s300_s14  ;;  %p275_p5 = por %p274_p4, %p273_p3 }
  0x2e   :  { %p276_p6 = pnand %p275_p5, %p269_p2 }
  0x9a   :  { %v74_v3 = vpop.permute.xlu0 %73  ;;  %v134_v7 = vpop.permute.xlu1 %133 }
  0x9b   :  { %v76_v4 = vsel %vm47_vm0, %v74_v3, 0.0  ;;  %v136_v9 = vsel %vm47_vm0, %v134_v7, 0.0 }
  0x9c   :  { %77 = vadd.xlane.f32.xlu1 %v76_v4 }
  0x9e   :  { %v104_v6 = vpop.permute.xlu0 %103 }
  0x9f   :  { %v106_v8 = vsel %vm47_vm0, %v104_v6, 0.0 }
  0xa0   :  { %107 = vadd.xlane.f32.xlu0 %v106_v8  ;;  %49 = vadd.xlane.f32.xlu1 %v48_v5 }
  0xa4   :  { %137 = vadd.xlane.f32.xlu0 %v136_v9 }
 0x129   :  { %v78_v10 = vpop.xlane.xlu1 %77 }
 0x12a   :  { %v79_v11 = vmul.f32 0.03125, %v78_v10 }
 0x12c   :  { %v355_v12 = vsub.f32 %v44_v2, %v79_v11 }
 0x12d   :  { %v108_v13 = vpop.xlane.xlu0 %107  ;;  %v50_v22 = vpop.xlane.xlu1 %49 }
 0x12e   :  { %v109_v14 = vmul.f32 0.03125, %v108_v13  ;;  %v81_v15 = vmul.f32 %v355_v12, %v355_v12  ;;  %v52_v23 = vmul.f32 0.03125, %v50_v22 }
 0x130   :  { %v359_v16 = vsub.f32 %v44_v2, %v109_v14  ;;  %83 = vrot.lane.b32.xlu0 %v81_v15, %s298_s12  ;;  %v367_v24 = vsub.f32 %v44_v2, %v52_v23  ;;  %v200_v23 = vld [vmem:[%s399_s2] ss:$0 sm:$0xff] }
 0x131   :  { %v138_v17 = vpop.xlane.xlu0 %137 }
 0x132   :  { %v139_v18 = vmul.f32 0.03125, %v138_v17  ;;  %v111_v19 = vmul.f32 %v359_v16, %v359_v16  ;;  %v54_v25 = vmul.f32 %v367_v24, %v367_v24 }
 0x134   :  { %v363_v20 = vsub.f32 %v44_v2, %v139_v18  ;;  %113 = vrot.lane.b32.xlu1 %v111_v19, %s300_s14  ;;  %v55_v26 = vsel %vm47_vm0, %v54_v25, 0.0 }
 0x136   :  { %v141_v21 = vmul.f32 %v363_v20, %v363_v20 }
 0x138   :  { %143 = vrot.lane.b32.xlu1 %v141_v21, %s299_s13 }
 0x14f   :  { %56 = vadd.xlane.f32.xlu0 %v55_v26 }
 0x1a2   :  { %v84_v27 = vpop.permute.xlu0 %83 }
 0x1a3   :  { %v86_v28 = vsel %vm47_vm0, %v84_v27, 0.0 }
 0x1a4   :  { %87 = vadd.xlane.f32.xlu1 %v86_v28 }
 0x1a6   :  { %v114_v29 = vpop.permute.xlu1 %113 }
 0x1a7   :  { %v116_v30 = vsel %vm47_vm0, %v114_v29, 0.0 }
 0x1a8   :  { %117 = vadd.xlane.f32.xlu0 %v116_v30 }
 0x1aa   :  { %v144_v31 = vpop.permute.xlu1 %143 }
 0x1ab   :  { %v146_v32 = vsel %vm47_vm0, %v144_v31, 0.0 }
 0x1ac   :  { %147 = vadd.xlane.f32.xlu0 %v146_v32 }
 0x1dc   :  { %v57_v33 = vpop.xlane.xlu0 %56 }
 0x1dd   :  { %v58_v34 = vmul.f32 0.032258064, %v57_v33 }
 0x1df   :  { %208 = vrsqrt.f32 %v58_v34  ;;  %vm61_vm1 = vcmp.eq.f32.partialorder %v58_v34, inf  ;;  %v64_v41 = vand.u32 2147483648, %v58_v34  ;;  %vm63_vm2 = vcmp.eq.f32.partialorder %v58_v34, 0.0 }
 0x1e9   :  { %v209_v36 = vpop.eup %208 }
 0x1ea   :  { %v60_v38 = vmul.f32 %v209_v36, %v58_v34 }
 0x1ec   :  { %v62_v42 = vsel %vm61_vm1, %v58_v34, %v60_v38 }
 0x1ed   :  { %v65_v45 = vsel %vm63_vm2, %v64_v41, %v62_v42 }
 0x1ee   :  { %v66_v47 = vadd.f32 1e-06, %v65_v45 }
 0x231   :  { %v88_v35 = vpop.xlane.xlu1 %87 }
 0x232   :  { %v89_v37 = vmul.f32 0.032258064, %v88_v35 }
 0x234   :  { %210 = vrsqrt.f32 %v89_v37  ;;  %vm92_vm3 = vcmp.eq.f32.partialorder %v89_v37, inf  ;;  %v95_v49 = vand.u32 2147483648, %v89_v37  ;;  %vm94_vm4 = vcmp.eq.f32.partialorder %v89_v37, 0.0 }
 0x235   :  { %v118_v39 = vpop.xlane.xlu0 %117 }
 0x236   :  { %v119_v40 = vmul.f32 0.032258064, %v118_v39 }
 0x238   :  { %212 = vrsqrt.f32 %v119_v40  ;;  %vm122_vm5 = vcmp.eq.f32.partialorder %v119_v40, inf  ;;  %v125_v55 = vand.u32 2147483648, %v119_v40  ;;  %vm124_vm6 = vcmp.eq.f32.partialorder %v119_v40, 0.0 }
 0x239   :  { %v148_v43 = vpop.xlane.xlu0 %147 }
 0x23a   :  { %v149_v44 = vmul.f32 0.032258064, %v148_v43 }
 0x23c   :  { %214 = vrsqrt.f32 %v149_v44  ;;  %vm152_vm7 = vcmp.eq.f32.partialorder %v149_v44, inf  ;;  %v155_v61 = vand.u32 2147483648, %v149_v44  ;;  %vm154_vm8 = vcmp.eq.f32.partialorder %v149_v44, 0.0 }
 0x23d   :  { %216 = vrcp.f32 %v66_v47 }
 0x23e   :  { %v211_v46 = vpop.eup %210 }
 0x23f   :  { %v91_v48 = vmul.f32 %v211_v46, %v89_v37 }
 0x241   :  { %v93_v50 = vsel %vm92_vm3, %v89_v37, %v91_v48 }
 0x242   :  { %v213_v51 = vpop.eup %212  ;;  %v96_v52 = vsel %vm94_vm4, %v95_v49, %v93_v50 }
 0x243   :  { %v97_v53 = vadd.f32 1e-06, %v96_v52  ;;  %v121_v54 = vmul.f32 %v213_v51, %v119_v40 }
 0x245   :  { %218 = vrcp.f32 %v97_v53  ;;  %v123_v56 = vsel %vm122_vm5, %v119_v40, %v121_v54 }
 0x246   :  { %v215_v57 = vpop.eup %214  ;;  %v126_v58 = vsel %vm124_vm6, %v125_v55, %v123_v56 }
 0x247   :  { %v151_v59 = vmul.f32 %v215_v57, %v149_v44  ;;  %v127_v60 = vadd.f32 1e-06, %v126_v58  ;;  %v217_v1 = vpop.eup %216 }
 0x248   :  { %v68_v3 = vmul.f32 %v217_v1, %v66_v47 }
 0x249   :  { %v153_v62 = vsel %vm152_vm7, %v149_v44, %v151_v59  ;;  %220 = vrcp.f32 %v127_v60 }
 0x24a   :  { %v156_v63 = vsel %vm154_vm8, %v155_v61, %v153_v62  ;;  %v69_v7 = vsub.f32 2.0, %v68_v3 }
 0x24b   :  { %v157_v0 = vadd.f32 1e-06, %v156_v63 }
 0x24c   :  { %v70_v13 = vmul.f32 %v217_v1, %v69_v7 }
 0x24d   :  { %222 = vrcp.f32 %v157_v0 }
 0x24e   :  { %v71_v21 = vmul.f32 %v70_v13, %v367_v24 }
 0x24f   :  { %v219_v2 = vpop.eup %218 }
 0x250   :  { %v99_v4 = vmul.f32 %v219_v2, %v97_v53 }
 0x252   :  { %v100_v5 = vsub.f32 2.0, %v99_v4 }
 0x253   :  { %v221_v6 = vpop.eup %220 }
 0x254   :  { %v129_v8 = vmul.f32 %v221_v6, %v127_v60  ;;  %v101_v9 = vmul.f32 %v219_v2, %v100_v5 }
 0x256   :  { %v130_v10 = vsub.f32 2.0, %v129_v8  ;;  %v102_v17 = vmul.f32 %v101_v9, %v355_v12  ;;  %v201_v12 = vld [vmem:[%s400_s3] ss:$0 sm:$0xff] }
 0x257   :  { %v223_v11 = vpop.eup %222 }
 0x258   :  { %v131_v14 = vmul.f32 %v221_v6, %v130_v10  ;;  %v159_v15 = vmul.f32 %v223_v11, %v157_v0  ;;  %v164_v26 = vsel %vm163_vm9, %v71_v21, %v102_v17 }
 0x25a   :  { %v160_v18 = vsub.f32 2.0, %v159_v15  ;;  %v132_v19 = vmul.f32 %v131_v14, %v359_v16 }
 0x25c   :  { %v161_v22 = vmul.f32 %v223_v11, %v160_v18  ;;  %v166_v27 = vsel %vm165_vm10, %v164_v26, %v132_v19 }
 0x25e   :  { %v162_v25 = vmul.f32 %v161_v22, %v363_v20 }
 0x260   :  { %v168_v28 = vsel %vm167_vm11, %v166_v27, %v162_v25 }
 0x261   :  { %v175_v16 = vmul.f32 %v200_v23, %v168_v28 }
 0x263   :  { %v182_v24 = vadd.f32 %v201_v12, %v175_v16 }
 0x265   :  { %183 = vst [vmem:[#allocation7] sm:$0xf] %v182_v24 }
 0x266   :  { %279 = shalt.err (!%p276_p6)
}
 0x267   :  { %s280_s22 = scalar_lea.hbm %s401_s4, 64 }
 0x268   :  { %p281_p7 = scmp.ne.s32.totalorder %s401_s4, %s280_s22  ;;  %p284_p8 = scmp.lt.u32.totalorder %s280_s22, %s401_s4 }
 0x26a   :  { %p286_p9 = pnand %p284_p8, %p281_p7 }
 0x26c   :  { %289 = shalt.err (!%p286_p9)
}
 0x26d   :  { %193 = dma.vmem_to_hbm [thread:$0]  %s191_s19, 64, %s401_s4, [#allocation4]  }
 0x26e   :  { %294 = dma.done.wait [#allocation4], 64  }
 0x26f   :  { %295 = vsyncadd [#allocation4], 4294967232 }
 0x270   :  { %197 = vsyncpa [#allocation3], 1 }
 0x271   :  { %198 = vsyncpa [#allocation6], 1 }
 0x272   :  { %199 = vsyncpa [#allocation4], 1 }

</bundles_post_ra>
